<compile_context>
chip_gen: v5e
topology: v5e:2x2
jax: 0.10.0
libtpu: 0.0.40
codegen_flags: <defaults>
</compile_context>

<pallas_src>
import functools

import jax
import jax.numpy as jnp
from jax.experimental import pallas as pl
from jax.experimental.pallas import tpu as pltpu


_TINY_K = 4  # contraction sizes <= this use VPU broadcast-FMA instead of an
             # MXU push.  TODO(synk): per review, profile raising this to ~16-32
             # for the toy (K=16/32) latency-bound config; at production
             # (padded >=128) widths keep the MXU path.


def _act(v, act):
    if act == "tanh":
        return jnp.tanh(v)
    if act == "relu":
        return jnp.maximum(v, 0.0)
    return v


# ----------------------------------------------------------------------------
# Fused DeepONet kernel: branch MLP + trunk MLP (transposed, spread) + combine.
# ----------------------------------------------------------------------------
def _deeponet_kernel(*refs, n_branch, n_trunk, act, C, coord_dim):
    it = iter(refs)
    x_ref = next(it)        # (tb, num_inp_fn_points)
    xt_ref = next(it)       # (coord_dim, Np*C), column j = query point j // C
    mask_ref = next(it)     # (C, Np*C) one-hot component masks (f32)
    blane_ref = next(it)    # (1, Np*C) interleaved output bias
    bw = [(next(it), next(it)) for _ in range(n_branch)]   # (in, out), (1, out)
    tw = [(next(it), next(it)) for _ in range(n_trunk)]    # (out, in), (out, 1)
    out_ref = next(it)      # (tb, Np*C)

    # --- branch MLP: (tb, F) -> (tb, C*T), fully VMEM-resident ---------------
    # TODO(synk): cast dot operands to bf16 (f32 accumulate) at production
    # widths for the v6e/v7x MXU; keep f32 at these toy sizes.
    h = x_ref[...]
    for i, (w_ref, b_ref) in enumerate(bw):
        h = jnp.dot(h, w_ref[...], preferred_element_type=jnp.float32) + b_ref[...]
        if i < n_branch - 1:            # branch net: final_act=False
            h = _act(h, act)

    # --- trunk MLP, evaluated transposed on the spread (Np*C)-column grid ----
    # NOTE(review): trunk biases ride along as (H, 1) VMEM tiles (lane-padded);
    # fold them into the dot via a ones-row if VMEM-tight at production H.
    g = xt_ref[...]
    for i, (w_ref, b_ref) in enumerate(tw):
        if i == 0 and coord_dim <= _TINY_K:
            # Tiny-K first layer on the VPU (broadcast FMAs) instead of an
            # almost-empty MXU pass.
            w = w_ref[...]              # (H, coord_dim)
            pre = b_ref[...]            # (H, 1) -> broadcasts over Np*C lanes
            for k in range(coord_dim):
                pre = pre + w[:, k:k + 1] * g[k:k + 1, :]
        else:
            pre = jnp.dot(w_ref[...], g,
                          preferred_element_type=jnp.float32) + b_ref[...]
        g = _act(pre, act)              # trunk net: final_act=True
    # g: (T, Np*C); g[t, j] = trunk(X_trunk[j // C])[t]

    # --- combine: one MXU matmul, interleaved lane-dense output --------------
    if C == 1:
        out_ref[...] = (jnp.dot(h, g, preferred_element_type=jnp.float32)
                        + blane_ref[...])
    else:
        # trunk_big[c*T + t, j] = g[t, j] * [j % C == c], so
        # (h @ trunk_big)[b, p*C + c] = sum_t branch[b, c*T + t] * trunk(x_p)[t]
        trunk_big = jnp.concatenate(
            [g * mask_ref[c:c + 1, :] for c in range(C)], axis=0)  # (C*T, Np*C)
        out_ref[...] = (jnp.dot(h, trunk_big,
                                preferred_element_type=jnp.float32)
                        + blane_ref[...])


# ----------------------------------------------------------------------------
# One-time (outside-jit) packing helpers — no per-call transposes in the
# forward, per review.
# ----------------------------------------------------------------------------
def pack_mlp_params(branch_params, trunk_params):
    """Branch kept (in, out)/(1, out); trunk pre-transposed to (out, in)/(out, 1)."""
    branch_packed = [(jnp.asarray(w), jnp.asarray(b).reshape(1, -1))
                     for (w, b) in branch_params]
    trunk_packed = [(jnp.asarray(w).T, jnp.asarray(b).reshape(-1, 1))
                    for (w, b) in trunk_params]
    return branch_packed, trunk_packed


def prepare_trunk_input(X_trunk, C):
    """(Np, coord_dim) -> (coord_dim, Np*C); column j is query point j // C.
    X_trunk is fixed per dataset, so this runs once, outside the forward."""
    return jnp.repeat(X_trunk, C, axis=0).T


def prepare_combine_constants(biases, Np, C):
    """One-hot component masks (C, Np*C) and interleaved bias (1, Np*C)."""
    NpC = Np * C
    j = jnp.arange(NpC)
    mask = (j[None, :] % C == jnp.arange(C)[:, None]).astype(jnp.float32)
    bias_lane = jnp.tile(jnp.asarray(biases, jnp.float32), Np).reshape(1, NpC)
    return mask, bias_lane


# ----------------------------------------------------------------------------
# Wrapper: single pallas_call, batch grid, everything else VMEM-resident.
# ----------------------------------------------------------------------------
@functools.partial(jax.jit, static_argnames=("act",))
def deeponet_forward(X, xt_spread, mask, bias_lane, branch_packed, trunk_packed,
                     act):
    B, F_in = X.shape
    coord_dim, NpC = xt_spread.shape
    C = mask.shape[0]
    n_branch, n_trunk = len(branch_packed), len(trunk_packed)

    # Batch tile: full batch at toy sizes; tile (multiple of 8) once B > 128 so
    # the parallel grid can split work across v7x's two TensorCores.
    tb = B
    if B > 128:
        for cand in (128, 64, 32, 16, 8):
            if B % cand == 0:
                tb = cand
                break
    grid = (B // tb,)

    def const(shape):
        return pl.BlockSpec(shape, lambda i: tuple(0 for _ in shape))

    args = [X, xt_spread, mask, bias_lane]
    in_specs = [
        pl.BlockSpec((tb, F_in), lambda i: (i, 0)),
        const((coord_dim, NpC)),
        const(mask.shape),
        const((1, NpC)),
    ]
    for w, b in branch_packed:
        args += [w, b]
        in_specs += [const(w.shape), const(b.shape)]
    for w, b in trunk_packed:
        args += [w, b]
        in_specs += [const(w.shape), const(b.shape)]

    kernel = functools.partial(
        _deeponet_kernel, n_branch=n_branch, n_trunk=n_trunk, act=act,
        C=C, coord_dim=coord_dim)

    return pl.pallas_call(
        kernel,
        out_shape=jax.ShapeDtypeStruct((B, NpC), jnp.float32),
        grid=grid,
        in_specs=in_specs,
        out_specs=pl.BlockSpec((tb, NpC), lambda i: (i, 0)),
        compiler_params=pltpu.CompilerParams(
            dimension_semantics=("parallel",),
            vmem_limit_bytes=32 * 1024 * 1024),
    )(*args)


# ----------------------------------------------------------------------------
# Parameter construction (deterministic, PyTorch nn.Linear-style init).
# ----------------------------------------------------------------------------
def init_linear_params(key, fan_in, fan_out):
    k1, k2 = jax.random.split(key)
    bound = 1.0 / jnp.sqrt(jnp.float32(fan_in))
    w = jax.random.uniform(k1, (fan_in, fan_out), jnp.float32, -bound, bound)
    b = jax.random.uniform(k2, (fan_out,), jnp.float32, -bound, bound)
    return w, b


def init_mlp_params(key, input_size, hidden_size, num_classes, depth):
    sizes = [input_size] + [hidden_size] * depth + [num_classes]
    params = []
    for i in range(len(sizes) - 1):
        key, sub = jax.random.split(key)
        params.append(init_linear_params(sub, sizes[i], sizes[i + 1]))
    return params


# Pure-JAX reference for correctness checking (matches the torch forward).
def deeponet_reference(X, X_trunk, branch_params, trunk_params, biases, act,
                       num_Y_components, num_tr_outputs):
    def act_fn(v):
        return jnp.tanh(v) if act == "tanh" else jnp.maximum(v, 0.0)

    def mlp(x, params, final_act):
        n = len(params)
        for i, (w, b) in enumerate(params):
            x = x @ w + b
            if i < n - 1 or final_act:
                x = act_fn(x)
        return x

    bo = mlp(X, branch_params, False)
    to = mlp(X_trunk, trunk_params, True)
    T = num_tr_outputs
    if num_Y_components == 1:
        return bo @ to.T + biases[0]
    outs = []
    for c in range(num_Y_components):
        outs.append(bo[:, c * T:(c + 1) * T] @ to.T + biases[c])
    out = jnp.stack(outs, axis=-1)
    return out.reshape(-1, X_trunk.shape[0] * num_Y_components)


if __name__ == "__main__":
    # Small DeepONet configuration (matches the torch module's toy sizes).
    num_layers = 3            # hidden layers per MLP
    num_neurons = 32
    act = "tanh"
    num_Y_components = 2
    num_tr_outputs = 16
    num_br_outputs = num_Y_components * num_tr_outputs
    num_inp_fn_points = 16
    out_coordinate_dimension = 2

    B = 8                     # batch of input functions
    Np = 16                   # number of trunk query points

    key = jax.random.PRNGKey(0)
    k_br, k_tr, k_x, k_xt = jax.random.split(key, 4)

    branch_params = init_mlp_params(k_br, num_inp_fn_points, num_neurons,
                                    num_br_outputs, num_layers)
    trunk_params = init_mlp_params(k_tr, out_coordinate_dimension, num_neurons,
                                   num_tr_outputs, num_layers)
    # self.bias = [nn.Parameter(torch.ones((1,))) for _ in range(C)]
    biases = jnp.ones((num_Y_components,), jnp.float32)

    X = jax.random.normal(k_x, (B, num_inp_fn_points), jnp.float32)
    X_trunk = jax.random.normal(k_xt, (Np, out_coordinate_dimension), jnp.float32)

    # One-time packing / constant preparation (outside the jitted forward).
    branch_packed, trunk_packed = pack_mlp_params(branch_params, trunk_params)
    xt_spread = prepare_trunk_input(X_trunk, num_Y_components)
    mask, bias_lane = prepare_combine_constants(biases, Np, num_Y_components)

    out = deeponet_forward(X, xt_spread, mask, bias_lane,
                           branch_packed, trunk_packed, act)
    out = jax.block_until_ready(out)

    ref = deeponet_reference(X, X_trunk, branch_params, trunk_params, biases,
                             act, num_Y_components, num_tr_outputs)
    assert out.shape == (B, Np * num_Y_components), out.shape
    assert jnp.allclose(out, ref, atol=1e-4, rtol=1e-4), "mismatch vs reference"

    print("KERNEL_OK")
</pallas_src>

<mosaic_0001>
module attributes {stable_mosaic.version = 11 : i64} {
  func.func @_deeponet_kernel(%arg0: i32, %arg1: memref<8x16xf32, #tpu.memory_space<vmem>>, %arg2: memref<2x32xf32, #tpu.memory_space<vmem>>, %arg3: memref<2x32xf32, #tpu.memory_space<vmem>>, %arg4: memref<1x32xf32, #tpu.memory_space<vmem>>, %arg5: memref<16x32xf32, #tpu.memory_space<vmem>>, %arg6: memref<1x32xf32, #tpu.memory_space<vmem>>, %arg7: memref<32x32xf32, #tpu.memory_space<vmem>>, %arg8: memref<1x32xf32, #tpu.memory_space<vmem>>, %arg9: memref<32x32xf32, #tpu.memory_space<vmem>>, %arg10: memref<1x32xf32, #tpu.memory_space<vmem>>, %arg11: memref<32x32xf32, #tpu.memory_space<vmem>>, %arg12: memref<1x32xf32, #tpu.memory_space<vmem>>, %arg13: memref<32x2xf32, #tpu.memory_space<vmem>>, %arg14: memref<32x1xf32, #tpu.memory_space<vmem>>, %arg15: memref<32x32xf32, #tpu.memory_space<vmem>>, %arg16: memref<32x1xf32, #tpu.memory_space<vmem>>, %arg17: memref<32x32xf32, #tpu.memory_space<vmem>>, %arg18: memref<32x1xf32, #tpu.memory_space<vmem>>, %arg19: memref<16x32xf32, #tpu.memory_space<vmem>>, %arg20: memref<16x1xf32, #tpu.memory_space<vmem>>, %arg21: memref<8x32xf32, #tpu.memory_space<vmem>>) attributes {dimension_semantics = [#tpu.dimension_semantics<parallel>], iteration_bounds = array<i64: 1>, scalar_prefetch = 0 : i64, scratch_operands = 0 : i64, tpu.core_type = #tpu.core_type<tc>, window_params = [{transform_indices = @transform_0, window_bounds = array<i64: 8, 16>}, {pipeline_mode = #tpu.pipeline_mode<synchronous>, transform_indices = @transform_1, window_bounds = array<i64: 2, 32>}, {pipeline_mode = #tpu.pipeline_mode<synchronous>, transform_indices = @transform_2, window_bounds = array<i64: 2, 32>}, {pipeline_mode = #tpu.pipeline_mode<synchronous>, transform_indices = @transform_3, window_bounds = array<i64: 1, 32>}, {pipeline_mode = #tpu.pipeline_mode<synchronous>, transform_indices = @transform_4, window_bounds = array<i64: 16, 32>}, {pipeline_mode = #tpu.pipeline_mode<synchronous>, transform_indices = @transform_5, window_bounds = array<i64: 1, 32>}, {pipeline_mode = #tpu.pipeline_mode<synchronous>, transform_indices = @transform_6, window_bounds = array<i64: 32, 32>}, {pipeline_mode = #tpu.pipeline_mode<synchronous>, transform_indices = @transform_7, window_bounds = array<i64: 1, 32>}, {pipeline_mode = #tpu.pipeline_mode<synchronous>, transform_indices = @transform_8, window_bounds = array<i64: 32, 32>}, {pipeline_mode = #tpu.pipeline_mode<synchronous>, transform_indices = @transform_9, window_bounds = array<i64: 1, 32>}, {pipeline_mode = #tpu.pipeline_mode<synchronous>, transform_indices = @transform_10, window_bounds = array<i64: 32, 32>}, {pipeline_mode = #tpu.pipeline_mode<synchronous>, transform_indices = @transform_11, window_bounds = array<i64: 1, 32>}, {pipeline_mode = #tpu.pipeline_mode<synchronous>, transform_indices = @transform_12, window_bounds = array<i64: 32, 2>}, {pipeline_mode = #tpu.pipeline_mode<synchronous>, transform_indices = @transform_13, window_bounds = array<i64: 32, 1>}, {pipeline_mode = #tpu.pipeline_mode<synchronous>, transform_indices = @transform_14, window_bounds = array<i64: 32, 32>}, {pipeline_mode = #tpu.pipeline_mode<synchronous>, transform_indices = @transform_15, window_bounds = array<i64: 32, 1>}, {pipeline_mode = #tpu.pipeline_mode<synchronous>, transform_indices = @transform_16, window_bounds = array<i64: 32, 32>}, {pipeline_mode = #tpu.pipeline_mode<synchronous>, transform_indices = @transform_17, window_bounds = array<i64: 32, 1>}, {pipeline_mode = #tpu.pipeline_mode<synchronous>, transform_indices = @transform_18, window_bounds = array<i64: 16, 32>}, {pipeline_mode = #tpu.pipeline_mode<synchronous>, transform_indices = @transform_19, window_bounds = array<i64: 16, 1>}, {transform_indices = @transform_20, window_bounds = array<i64: 8, 32>}]} {
    %c0 = arith.constant 0 : index
    %c0_0 = arith.constant 0 : index
    %0 = vector.load %arg1[%c0, %c0_0] : memref<8x16xf32, #tpu.memory_space<vmem>>, vector<8x16xf32>
    %c0_1 = arith.constant 0 : index
    %c0_2 = arith.constant 0 : index
    %1 = vector.load %arg5[%c0_1, %c0_2] : memref<16x32xf32, #tpu.memory_space<vmem>>, vector<16x32xf32>
    %cst = arith.constant dense<0.000000e+00> : vector<8x32xf32>
    %2 = tpu.matmul %0, %1, %cst {dimension_numbers = #tpu.dot_dimension_numbers<[1], [0], [0], [1], [0, 0, 1, 1], [], []>} : vector<8x16xf32>, vector<16x32xf32>, vector<8x32xf32> -> vector<8x32xf32>
    %c0_3 = arith.constant 0 : index
    %c0_4 = arith.constant 0 : index
    %3 = vector.load %arg6[%c0_3, %c0_4] : memref<1x32xf32, #tpu.memory_space<vmem>>, vector<1x32xf32>
    %4 = vector.broadcast %3 : vector<1x32xf32> to vector<8x32xf32>
    %5 = arith.addf %2, %4 : vector<8x32xf32>
    %6 = math.tanh %5 : vector<8x32xf32>
    %c0_5 = arith.constant 0 : index
    %c0_6 = arith.constant 0 : index
    %7 = vector.load %arg7[%c0_5, %c0_6] : memref<32x32xf32, #tpu.memory_space<vmem>>, vector<32x32xf32>
    %cst_7 = arith.constant dense<0.000000e+00> : vector<8x32xf32>
    %8 = tpu.matmul %6, %7, %cst_7 {dimension_numbers = #tpu.dot_dimension_numbers<[1], [0], [0], [1], [0, 0, 1, 1], [], []>} : vector<8x32xf32>, vector<32x32xf32>, vector<8x32xf32> -> vector<8x32xf32>
    %c0_8 = arith.constant 0 : index
    %c0_9 = arith.constant 0 : index
    %9 = vector.load %arg8[%c0_8, %c0_9] : memref<1x32xf32, #tpu.memory_space<vmem>>, vector<1x32xf32>
    %10 = vector.broadcast %9 : vector<1x32xf32> to vector<8x32xf32>
    %11 = arith.addf %8, %10 : vector<8x32xf32>
    %12 = math.tanh %11 : vector<8x32xf32>
    %c0_10 = arith.constant 0 : index
    %c0_11 = arith.constant 0 : index
    %13 = vector.load %arg9[%c0_10, %c0_11] : memref<32x32xf32, #tpu.memory_space<vmem>>, vector<32x32xf32>
    %cst_12 = arith.constant dense<0.000000e+00> : vector<8x32xf32>
    %14 = tpu.matmul %12, %13, %cst_12 {dimension_numbers = #tpu.dot_dimension_numbers<[1], [0], [0], [1], [0, 0, 1, 1], [], []>} : vector<8x32xf32>, vector<32x32xf32>, vector<8x32xf32> -> vector<8x32xf32>
    %c0_13 = arith.constant 0 : index
    %c0_14 = arith.constant 0 : index
    %15 = vector.load %arg10[%c0_13, %c0_14] : memref<1x32xf32, #tpu.memory_space<vmem>>, vector<1x32xf32>
    %16 = vector.broadcast %15 : vector<1x32xf32> to vector<8x32xf32>
    %17 = arith.addf %14, %16 : vector<8x32xf32>
    %18 = math.tanh %17 : vector<8x32xf32>
    %c0_15 = arith.constant 0 : index
    %c0_16 = arith.constant 0 : index
    %19 = vector.load %arg11[%c0_15, %c0_16] : memref<32x32xf32, #tpu.memory_space<vmem>>, vector<32x32xf32>
    %cst_17 = arith.constant dense<0.000000e+00> : vector<8x32xf32>
    %20 = tpu.matmul %18, %19, %cst_17 {dimension_numbers = #tpu.dot_dimension_numbers<[1], [0], [0], [1], [0, 0, 1, 1], [], []>} : vector<8x32xf32>, vector<32x32xf32>, vector<8x32xf32> -> vector<8x32xf32>
    %c0_18 = arith.constant 0 : index
    %c0_19 = arith.constant 0 : index
    %21 = vector.load %arg12[%c0_18, %c0_19] : memref<1x32xf32, #tpu.memory_space<vmem>>, vector<1x32xf32>
    %22 = vector.broadcast %21 : vector<1x32xf32> to vector<8x32xf32>
    %23 = arith.addf %20, %22 : vector<8x32xf32>
    %c0_20 = arith.constant 0 : index
    %c0_21 = arith.constant 0 : index
    %24 = vector.load %arg2[%c0_20, %c0_21] : memref<2x32xf32, #tpu.memory_space<vmem>>, vector<2x32xf32>
    %c0_22 = arith.constant 0 : index
    %c0_23 = arith.constant 0 : index
    %25 = vector.load %arg13[%c0_22, %c0_23] : memref<32x2xf32, #tpu.memory_space<vmem>>, vector<32x2xf32>
    %c0_24 = arith.constant 0 : index
    %c0_25 = arith.constant 0 : index
    %26 = vector.load %arg14[%c0_24, %c0_25] : memref<32x1xf32, #tpu.memory_space<vmem>>, vector<32x1xf32>
    %27 = vector.extract_strided_slice %25 {offsets = [0, 0], sizes = [32, 1], strides = [1, 1]} : vector<32x2xf32> to vector<32x1xf32>
    %28 = vector.extract_strided_slice %24 {offsets = [0, 0], sizes = [1, 32], strides = [1, 1]} : vector<2x32xf32> to vector<1x32xf32>
    %29 = vector.broadcast %27 : vector<32x1xf32> to vector<32x32xf32>
    %30 = vector.broadcast %28 : vector<1x32xf32> to vector<32x32xf32>
    %31 = arith.mulf %29, %30 : vector<32x32xf32>
    %32 = vector.broadcast %26 : vector<32x1xf32> to vector<32x32xf32>
    %33 = arith.addf %32, %31 : vector<32x32xf32>
    %34 = vector.extract_strided_slice %25 {offsets = [0, 1], sizes = [32, 1], strides = [1, 1]} : vector<32x2xf32> to vector<32x1xf32>
    %35 = vector.extract_strided_slice %24 {offsets = [1, 0], sizes = [1, 32], strides = [1, 1]} : vector<2x32xf32> to vector<1x32xf32>
    %36 = vector.broadcast %34 : vector<32x1xf32> to vector<32x32xf32>
    %37 = vector.broadcast %35 : vector<1x32xf32> to vector<32x32xf32>
    %38 = arith.mulf %36, %37 : vector<32x32xf32>
    %39 = arith.addf %33, %38 : vector<32x32xf32>
    %40 = math.tanh %39 : vector<32x32xf32>
    %c0_26 = arith.constant 0 : index
    %c0_27 = arith.constant 0 : index
    %41 = vector.load %arg15[%c0_26, %c0_27] : memref<32x32xf32, #tpu.memory_space<vmem>>, vector<32x32xf32>
    %cst_28 = arith.constant dense<0.000000e+00> : vector<32x32xf32>
    %42 = tpu.matmul %41, %40, %cst_28 {dimension_numbers = #tpu.dot_dimension_numbers<[1], [0], [0], [1], [0, 0, 1, 1], [], []>} : vector<32x32xf32>, vector<32x32xf32>, vector<32x32xf32> -> vector<32x32xf32>
    %c0_29 = arith.constant 0 : index
    %c0_30 = arith.constant 0 : index
    %43 = vector.load %arg16[%c0_29, %c0_30] : memref<32x1xf32, #tpu.memory_space<vmem>>, vector<32x1xf32>
    %44 = vector.broadcast %43 : vector<32x1xf32> to vector<32x32xf32>
    %45 = arith.addf %42, %44 : vector<32x32xf32>
    %46 = math.tanh %45 : vector<32x32xf32>
    %c0_31 = arith.constant 0 : index
    %c0_32 = arith.constant 0 : index
    %47 = vector.load %arg17[%c0_31, %c0_32] : memref<32x32xf32, #tpu.memory_space<vmem>>, vector<32x32xf32>
    %cst_33 = arith.constant dense<0.000000e+00> : vector<32x32xf32>
    %48 = tpu.matmul %47, %46, %cst_33 {dimension_numbers = #tpu.dot_dimension_numbers<[1], [0], [0], [1], [0, 0, 1, 1], [], []>} : vector<32x32xf32>, vector<32x32xf32>, vector<32x32xf32> -> vector<32x32xf32>
    %c0_34 = arith.constant 0 : index
    %c0_35 = arith.constant 0 : index
    %49 = vector.load %arg18[%c0_34, %c0_35] : memref<32x1xf32, #tpu.memory_space<vmem>>, vector<32x1xf32>
    %50 = vector.broadcast %49 : vector<32x1xf32> to vector<32x32xf32>
    %51 = arith.addf %48, %50 : vector<32x32xf32>
    %52 = math.tanh %51 : vector<32x32xf32>
    %c0_36 = arith.constant 0 : index
    %c0_37 = arith.constant 0 : index
    %53 = vector.load %arg19[%c0_36, %c0_37] : memref<16x32xf32, #tpu.memory_space<vmem>>, vector<16x32xf32>
    %cst_38 = arith.constant dense<0.000000e+00> : vector<16x32xf32>
    %54 = tpu.matmul %53, %52, %cst_38 {dimension_numbers = #tpu.dot_dimension_numbers<[1], [0], [0], [1], [0, 0, 1, 1], [], []>} : vector<16x32xf32>, vector<32x32xf32>, vector<16x32xf32> -> vector<16x32xf32>
    %c0_39 = arith.constant 0 : index
    %c0_40 = arith.constant 0 : index
    %55 = vector.load %arg20[%c0_39, %c0_40] : memref<16x1xf32, #tpu.memory_space<vmem>>, vector<16x1xf32>
    %56 = vector.broadcast %55 : vector<16x1xf32> to vector<16x32xf32>
    %57 = arith.addf %54, %56 : vector<16x32xf32>
    %58 = math.tanh %57 : vector<16x32xf32>
    %c0_41 = arith.constant 0 : index
    %c0_42 = arith.constant 0 : index
    %59 = vector.load %arg3[%c0_41, %c0_42] : memref<2x32xf32, #tpu.memory_space<vmem>>, vector<1x32xf32>
    %60 = vector.broadcast %59 : vector<1x32xf32> to vector<16x32xf32>
    %61 = arith.mulf %58, %60 : vector<16x32xf32>
    %c1 = arith.constant 1 : index
    %c0_43 = arith.constant 0 : index
    %62 = vector.load %arg3[%c1, %c0_43] : memref<2x32xf32, #tpu.memory_space<vmem>>, vector<1x32xf32>
    %63 = vector.broadcast %62 : vector<1x32xf32> to vector<16x32xf32>
    %64 = arith.mulf %58, %63 : vector<16x32xf32>
    %65 = tpu.concatenate %61, %64 in 0 : vector<16x32xf32>, vector<16x32xf32> -> vector<32x32xf32>
    %cst_44 = arith.constant dense<0.000000e+00> : vector<8x32xf32>
    %66 = tpu.matmul %23, %65, %cst_44 {dimension_numbers = #tpu.dot_dimension_numbers<[1], [0], [0], [1], [0, 0, 1, 1], [], []>} : vector<8x32xf32>, vector<32x32xf32>, vector<8x32xf32> -> vector<8x32xf32>
    %c0_45 = arith.constant 0 : index
    %c0_46 = arith.constant 0 : index
    %67 = vector.load %arg4[%c0_45, %c0_46] : memref<1x32xf32, #tpu.memory_space<vmem>>, vector<1x32xf32>
    %68 = vector.broadcast %67 : vector<1x32xf32> to vector<8x32xf32>
    %69 = arith.addf %66, %68 : vector<8x32xf32>
    %c0_47 = arith.constant 0 : index
    %c0_48 = arith.constant 0 : index
    %70 = vector.load %arg21[%c0_47, %c0_48] : memref<8x32xf32, #tpu.memory_space<vmem>>, vector<8x32xf32>
    tpu.vector_store %arg21[%c0_47, %c0_48], %69 {strides = array<i32>} : memref<8x32xf32, #tpu.memory_space<vmem>>, vector<8x32xf32>,
    return
  }
  func.func @transform_0(%arg0: i32) -> (i32, i32) {
    %c0_i32 = arith.constant 0 : i32
    %c0_i32_0 = arith.constant 0 : i32
    return %arg0, %c0_i32 : i32, i32
  }
  func.func @transform_1(%arg0: i32) -> (i32, i32) {
    %c0_i32 = arith.constant 0 : i32
    %c0_i32_0 = arith.constant 0 : i32
    %c0_i32_1 = arith.constant 0 : i32
    return %c0_i32, %c0_i32_0 : i32, i32
  }
  func.func @transform_2(%arg0: i32) -> (i32, i32) {
    %c0_i32 = arith.constant 0 : i32
    %c0_i32_0 = arith.constant 0 : i32
    %c0_i32_1 = arith.constant 0 : i32
    return %c0_i32, %c0_i32_0 : i32, i32
  }
  func.func @transform_3(%arg0: i32) -> (i32, i32) {
    %c0_i32 = arith.constant 0 : i32
    %c0_i32_0 = arith.constant 0 : i32
    %c0_i32_1 = arith.constant 0 : i32
    return %c0_i32, %c0_i32_0 : i32, i32
  }
  func.func @transform_4(%arg0: i32) -> (i32, i32) {
    %c0_i32 = arith.constant 0 : i32
    %c0_i32_0 = arith.constant 0 : i32
    %c0_i32_1 = arith.constant 0 : i32
    return %c0_i32, %c0_i32_0 : i32, i32
  }
  func.func @transform_5(%arg0: i32) -> (i32, i32) {
    %c0_i32 = arith.constant 0 : i32
    %c0_i32_0 = arith.constant 0 : i32
    %c0_i32_1 = arith.constant 0 : i32
    return %c0_i32, %c0_i32_0 : i32, i32
  }
  func.func @transform_6(%arg0: i32) -> (i32, i32) {
    %c0_i32 = arith.constant 0 : i32
    %c0_i32_0 = arith.constant 0 : i32
    %c0_i32_1 = arith.constant 0 : i32
    return %c0_i32, %c0_i32_0 : i32, i32
  }
  func.func @transform_7(%arg0: i32) -> (i32, i32) {
    %c0_i32 = arith.constant 0 : i32
    %c0_i32_0 = arith.constant 0 : i32
    %c0_i32_1 = arith.constant 0 : i32
    return %c0_i32, %c0_i32_0 : i32, i32
  }
  func.func @transform_8(%arg0: i32) -> (i32, i32) {
    %c0_i32 = arith.constant 0 : i32
    %c0_i32_0 = arith.constant 0 : i32
    %c0_i32_1 = arith.constant 0 : i32
    return %c0_i32, %c0_i32_0 : i32, i32
  }
  func.func @transform_9(%arg0: i32) -> (i32, i32) {
    %c0_i32 = arith.constant 0 : i32
    %c0_i32_0 = arith.constant 0 : i32
    %c0_i32_1 = arith.constant 0 : i32
    return %c0_i32, %c0_i32_0 : i32, i32
  }
  func.func @transform_10(%arg0: i32) -> (i32, i32) {
    %c0_i32 = arith.constant 0 : i32
    %c0_i32_0 = arith.constant 0 : i32
    %c0_i32_1 = arith.constant 0 : i32
    return %c0_i32, %c0_i32_0 : i32, i32
  }
  func.func @transform_11(%arg0: i32) -> (i32, i32) {
    %c0_i32 = arith.constant 0 : i32
    %c0_i32_0 = arith.constant 0 : i32
    %c0_i32_1 = arith.constant 0 : i32
    return %c0_i32, %c0_i32_0 : i32, i32
  }
  func.func @transform_12(%arg0: i32) -> (i32, i32) {
    %c0_i32 = arith.constant 0 : i32
    %c0_i32_0 = arith.constant 0 : i32
    %c0_i32_1 = arith.constant 0 : i32
    return %c0_i32, %c0_i32_0 : i32, i32
  }
  func.func @transform_13(%arg0: i32) -> (i32, i32) {
    %c0_i32 = arith.constant 0 : i32
    %c0_i32_0 = arith.constant 0 : i32
    %c0_i32_1 = arith.constant 0 : i32
    return %c0_i32, %c0_i32_0 : i32, i32
  }
  func.func @transform_14(%arg0: i32) -> (i32, i32) {
    %c0_i32 = arith.constant 0 : i32
    %c0_i32_0 = arith.constant 0 : i32
    %c0_i32_1 = arith.constant 0 : i32
    return %c0_i32, %c0_i32_0 : i32, i32
  }
  func.func @transform_15(%arg0: i32) -> (i32, i32) {
    %c0_i32 = arith.constant 0 : i32
    %c0_i32_0 = arith.constant 0 : i32
    %c0_i32_1 = arith.constant 0 : i32
    return %c0_i32, %c0_i32_0 : i32, i32
  }
  func.func @transform_16(%arg0: i32) -> (i32, i32) {
    %c0_i32 = arith.constant 0 : i32
    %c0_i32_0 = arith.constant 0 : i32
    %c0_i32_1 = arith.constant 0 : i32
    return %c0_i32, %c0_i32_0 : i32, i32
  }
  func.func @transform_17(%arg0: i32) -> (i32, i32) {
    %c0_i32 = arith.constant 0 : i32
    %c0_i32_0 = arith.constant 0 : i32
    %c0_i32_1 = arith.constant 0 : i32
    return %c0_i32, %c0_i32_0 : i32, i32
  }
  func.func @transform_18(%arg0: i32) -> (i32, i32) {
    %c0_i32 = arith.constant 0 : i32
    %c0_i32_0 = arith.constant 0 : i32
    %c0_i32_1 = arith.constant 0 : i32
    return %c0_i32, %c0_i32_0 : i32, i32
  }
  func.func @transform_19(%arg0: i32) -> (i32, i32) {
    %c0_i32 = arith.constant 0 : i32
    %c0_i32_0 = arith.constant 0 : i32
    %c0_i32_1 = arith.constant 0 : i32
    return %c0_i32, %c0_i32_0 : i32, i32
  }
  func.func @transform_20(%arg0: i32) -> (i32, i32) {
    %c0_i32 = arith.constant 0 : i32
    %c0_i32_0 = arith.constant 0 : i32
    return %arg0, %c0_i32 : i32, i32
  }
}

</mosaic_0001>

<bundles_post_ra>
// kernel: deeponet_forward.1
= control target key start
LH: loop header
LB: loop body
LE: loop exit
PB: predicated region body
PF: predicated region fallthrough
CT: control target
= control target key end

     0   :  { %s1223_s0 = inlined_call_operand.hbm [shape: f32[8,16], index: 0, kind: input, shape index: {}]   ;;  %s1224_s1 = inlined_call_operand.hbm [shape: f32[2,32], index: 1, kind: input, shape index: {}]   ;;  %s1225_s2 = inlined_call_operand.hbm [shape: f32[2,32], index: 2, kind: input, shape index: {}]   ;;  %s1226_s3 = inlined_call_operand.vmem [shape: f32[1,32], index: 3, kind: input, shape index: {}]   ;;  %s1227_s4 = inlined_call_operand.vmem [shape: f32[16,32], index: 4, kind: input, shape index: {}]   ;;  %s1228_s5 = inlined_call_operand.hbm [shape: f32[1,32], index: 5, kind: input, shape index: {}]   ;;  %s1229_s6 = inlined_call_operand.vmem [shape: f32[32,32], index: 6, kind: input, shape index: {}]   ;;  %s1230_s7 = inlined_call_operand.hbm [shape: f32[1,32], index: 7, kind: input, shape index: {}]   ;;  %s1231_s8 = inlined_call_operand.vmem [shape: f32[32,32], index: 8, kind: input, shape index: {}]   ;;  %s1232_s9 = inlined_call_operand.hbm [shape: f32[1,32], index: 9, kind: input, shape index: {}]   ;;  %s1233_s10 = inlined_call_operand.vmem [shape: f32[32,32], index: 10, kind: input, shape index: {}]   ;;  %s1234_s11 = inlined_call_operand.hbm [shape: f32[1,32], index: 11, kind: input, shape index: {}]   ;;  %s1235_s12 = inlined_call_operand.vmem [shape: f32[32,2], index: 12, kind: input, shape index: {}]   ;;  %s1236_s13 = inlined_call_operand.vmem [shape: f32[32,1], index: 13, kind: input, shape index: {}]   ;;  %s1237_s14 = inlined_call_operand.vmem [shape: f32[32,32], index: 14, kind: input, shape index: {}]   ;;  %s1238_s15 = inlined_call_operand.vmem [shape: f32[32,1], index: 15, kind: input, shape index: {}]   ;;  %s1239_s16 = inlined_call_operand.hbm [shape: f32[32,32], index: 16, kind: input, shape index: {}]   ;;  %s1240_s17 = inlined_call_operand.vmem [shape: f32[32,1], index: 17, kind: input, shape index: {}]   ;;  %s1241_s18 = inlined_call_operand.vmem [shape: f32[16,32], index: 18, kind: input, shape index: {}]   ;;  %s1242_s19 = inlined_call_operand.vmem [shape: f32[16,1], index: 19, kind: input, shape index: {}]   ;;  %s1243_s20 = inlined_call_operand.hbm [shape: f32[8,32], index: 20, kind: output, shape index: {}]  }
   0x1   :  { %1245 = sst [smem:[#allocation23_spill]] %s1223_s0 }
   0x2   :  { %1246 = sst [smem:[#allocation24_spill]] %s1224_s1 }
   0x3   :  { %1247 = sst [smem:[#allocation25_spill]] %s1225_s2 }
   0x4   :  { %1248 = sst [smem:[#allocation26_spill]] %s1226_s3 }
   0x5   :  { %1249 = sst [smem:[#allocation27_spill]] %s1227_s4 }
   0x6   :  { %1250 = sst [smem:[#allocation28_spill]] %s1243_s20 }
   0x7   :  { %25 = vsyncpa [#allocation3], 0 }
   0x8   :  { %26 = vsyncpa [#allocation6], 0 }
   0x9   :  { %27 = vsyncpa [#allocation9], 0 }
   0xa   :  { %28 = vsyncpa [#allocation12], 0 }
   0xb   :  { %29 = vsyncpa [#allocation15], 0  ;;  %s1251_s23 = sld [smem:[#allocation24_spill]] }
  0x11   :  { %s47_s24 = sshll.u32 %s1251_s23, 4  ;;  %s48_s24 = int_to_ptr.hbm [resolvable:$true] %s47_s24 }
  0x12   :  { %30 = vsyncpa [#allocation4], 0  ;;  %s946_s2 = smov [#allocation5]   ;;  %s73_s27 = sshll.u32 %s1228_s5, 4  ;;  %s74_s27 = int_to_ptr.hbm [resolvable:$true] %s73_s27 }
  0x13   :  { %s49_s25 = sshll.u32 %s946_s2, 4  ;;  %s947_s28 = smov [#allocation8]   ;;  %s50_s25 = int_to_ptr.vmem [resolvable:$true] %s49_s25 }
  0x14   :  { %52 = dma.hbm_to_vmem [thread:$0]  %s48_s24, 32, %s50_s25, [#allocation6]  }
  0x15   :  { %s75_s4 = sshll.u32 %s947_s28, 4  ;;  %s99_s0 = sshll.u32 %s1232_s9, 4  ;;  %s76_s4 = int_to_ptr.vmem [resolvable:$true] %s75_s4  ;;  %s100_s0 = int_to_ptr.hbm [resolvable:$true] %s99_s0 }
  0x16   :  { %78 = dma.hbm_to_vmem [thread:$0]  %s74_s27, 16, %s76_s4, [#allocation9]  }
  0x17   :  { %s1252_s22 = sld [smem:[#allocation23_spill]]  ;;  %s948_s2 = smov [#allocation11]  }
  0x18   :  { %s101_s20 = sshll.u32 %s948_s2, 4  ;;  %s949_s5 = smov [#allocation2]   ;;  %s102_s20 = int_to_ptr.vmem [resolvable:$true] %s101_s20 }
  0x19   :  { %104 = dma.hbm_to_vmem [thread:$0]  %s100_s0, 16, %s102_s20, [#allocation12]  }
  0x1a   :  { %s38_s24 = sshll.u32 %s949_s5, 4  ;;  %s1253_s26 = sld [smem:[#allocation25_spill]]  ;;  %s39_s24 = int_to_ptr.vmem [resolvable:$true] %s38_s24 }
  0x1b   :  { %s86_s4 = sshll.u32 %s1230_s7, 4  ;;  %s950_s29 = smov [#allocation7]   ;;  %s87_s4 = int_to_ptr.hbm [resolvable:$true] %s86_s4 }
  0x1c   :  { %s60_s30 = sshll.u32 %s950_s29, 4  ;;  %s951_s21 = smov [#allocation10]   ;;  %s61_s30 = int_to_ptr.vmem [resolvable:$true] %s60_s30 }
  0x1d   :  { %s36_s23 = sshll.u32 %s1252_s22, 4  ;;  %s88_s20 = sshll.u32 %s951_s21, 4  ;;  %s37_s23 = int_to_ptr.hbm [resolvable:$true] %s36_s23  ;;  %s89_s20 = int_to_ptr.vmem [resolvable:$true] %s88_s20 }
  0x1e   :  { %41 = dma.hbm_to_vmem [thread:$0]  %s37_s23, 128, %s39_s24, [#allocation3]  }
  0x1f   :  { %s112_s22 = sshll.u32 %s1234_s11, 4  ;;  %s130_s5 = sshll.u32 %s1239_s16, 4  ;;  %s113_s22 = int_to_ptr.hbm [resolvable:$true] %s112_s22  ;;  %s131_s5 = int_to_ptr.hbm [resolvable:$true] %s130_s5 }
  0x20   :  { %s58_s28 = sshll.u32 %s1253_s26, 4  ;;  %s952_s24 = smov [#allocation13]   ;;  %s59_s28 = int_to_ptr.hbm [resolvable:$true] %s58_s28 }
  0x21   :  { %63 = dma.hbm_to_vmem [thread:$0]  %s59_s28, 32, %s61_s30, [#allocation6]  }
  0x22   :  { %91 = dma.hbm_to_vmem [thread:$0]  %s87_s4, 16, %s89_s20, [#allocation9]  }
  0x23   :  { %s114_s7 = sshll.u32 %s952_s24, 4  ;;  %s953_s25 = smov [#allocation14]   ;;  %s115_s7 = int_to_ptr.vmem [resolvable:$true] %s114_s7 }
  0x24   :  { %117 = dma.hbm_to_vmem [thread:$0]  %s113_s22, 16, %s115_s7, [#allocation12]  }
  0x25   :  { %s132_s3 = sshll.u32 %s953_s25, 4  ;;  %s954_s26 = smov 128   ;;  %s133_s3 = int_to_ptr.vmem [resolvable:$true] %s132_s3 }
  0x26   :  { %s955_s28 = smov 8  }
  0x27   :  { %138 = dma.hbm_to_vmem [thread:$0]  %s131_s5, 512, %s133_s3, [#allocation15], %s954_s26, %s954_s26, %s955_s28  }
  0x28   :  { %934 = dma.done.wait [#allocation3], 128  }
  0x29   :  { %935 = vsyncadd [#allocation3], 4294967168 }
  0x2a   :  { %936 = dma.done.wait [#allocation6], 64  }
  0x2b   :  { %937 = vsyncadd [#allocation6], 4294967232 }
  0x2c   :  { %938 = dma.done.wait [#allocation9], 32  }
  0x2d   :  { %939 = vsyncadd [#allocation9], 4294967264 }
  0x2e   :  { %940 = dma.done.wait [#allocation12], 32  }
  0x2f   :  { %941 = vsyncadd [#allocation12], 4294967264 }
  0x30   :  { %942 = dma.done.wait [#allocation15], 512  }
  0x31   :  { %943 = vsyncadd [#allocation15], 4294966784  ;;  %v956_v0 = vmov 0   ;;  %v313_v1 = vld [vmem:[%s1236_s13 + $0x18] sm:$0xff]  ;;  %v307_v3 = vld [vmem:[%s1235_s12 + $0x8] sm:$0xff]  ;;  %v957_v6 = vmov 1  }
  0x32   :  { %671 = vset.pattern.permute.xlu2 %v956_v0  ;;  %669 = vset.pattern.permute.xlu1 %v956_v0  ;;  %v309_v2 = vld [vmem:[%s1235_s12 + $0x18] sm:$0xff]  ;;  %v308_v4 = vld [vmem:[%s1235_s12 + $0x10] sm:$0xff]  ;;  %v311_v7 = vld [vmem:[%s1236_s13 + $0x8] sm:$0xff]  ;;  %s1254_s3 = sld [smem:[#allocation27_spill]]  ;;  %vm184_vm0 = vcmask 130048   ;;  %vm217_vm1 = vcmask 261120  }
  0x33   :  { %668 = vset.pattern.permute.xlu0 %v956_v0  ;;  %356 = vperm.xlu1 %669, %v313_v1   ;;  %v312_v5 = vld [vmem:[%s1236_s13 + $0x10] sm:$0xff]  ;;  %v306_v8 = vld [vmem:[%s1235_s12] sm:$0xff]  ;;  %v472_v13 = vld [vmem:[%s1240_s17 + $0x18] sm:$0xff]  ;;  %s958_s16 = smov [#allocation16]   ;;  %s1256_s4 = sld [smem:[#allocation28_spill]] }
  0x34   :  { %331 = vperm.xlu0 %668, %v309_v2   ;;  %321 = vperm.xlu2 %671, %v307_v3   ;;  %v310_v9 = vld [vmem:[%s1236_s13] sm:$0xff]  ;;  %v398_v12 = vld [vmem:[%s1238_s15 + $0x10] sm:$0xff]  ;;  %v470_v14 = vld [vmem:[%s1240_s17 + $0x8] sm:$0xff]  ;;  %s1255_s13 = sld [smem:[#allocation26_spill]]  ;;  %s624_s9 = sshll.u32 %s958_s16, 4  ;;  %s625_s9 = int_to_ptr.vmem [resolvable:$true] %s624_s9 }
  0x35   :  { %v540_v15 = vld [vmem:[%s1242_s19] sm:$0xff]  ;;  %v305_v18 = vld [vmem:[#allocation5] sm:$0x3]  ;;  %v399_v29 = vld [vmem:[%s1238_s15 + $0x18] sm:$0xff] }
  0x36   :  { %v177_v16 = vld [vmem:[#allocation2] sm:$0xff]  ;;  %v334_v21 = vperm.slane %v305_v18, 0  ;;  %v379_v23 = vperm.slane %v305_v18, 1  ;;  %v397_v43 = vld [vmem:[%s1238_s15 + $0x8] sm:$0xff]  ;;  %v471_v53 = vld [vmem:[%s1240_s17 + $0x10] sm:$0xff] }
  0x37   :  { %v396_v35 = vld [vmem:[%s1238_s15] sm:$0xff]  ;;  %v541_v58 = vld [vmem:[%s1242_s19 + $0x8] sm:$0xff]  ;;  %v212_v59 = vld [vmem:[%s1229_s6 + $0x18] sm:$0xff] }
  0x38   :  { %v179_v10 = vld [vmem:[%s1254_s3 + $0x8] sm:$0xff]  ;;  %v178_v11 = vld [vmem:[%s1254_s3] sm:$0xff]  ;;  %v211_v60 = vld [vmem:[%s1229_s6 + $0x10] sm:$0xff]  ;;  %233 = vmatpush.msra.mxu3 %v212_v59 }
  0x39   :  { %202 = vmatpush.msra.mxu2 %v179_v10  ;;  %v469_v54 = vld [vmem:[%s1240_s17] sm:$0xff]  ;;  %v393_v61 = vld [vmem:[%s1237_s14 + $0x8] sm:$0xff]  ;;  %v395_v1 = vld [vmem:[%s1237_s14 + $0x18] sm:$0xff]  ;;  %s626_s29 = sshll.u32 %s1256_s4, 4  ;;  %s627_s29 = int_to_ptr.hbm [resolvable:$true] %s626_s29 }
  0x3a   :  { %v392_v56 = vld [vmem:[%s1237_s14] sm:$0xff]  ;;  %v210_v62 = vld [vmem:[%s1229_s6 + $0x8] sm:$0xff]  ;;  %234 = vmatpush.msra.mxu3 %v211_v60 }
  0x3b   :  { %670 = vset.pattern.permute.xlu1 %v957_v6  ;;  %203 = vmatpush.msra.mxu2 %v178_v11  ;;  %v209_v63 = vld [vmem:[%s1229_s6] sm:$0xff]  ;;  %v539_v59 = vld [vmem:[%s1241_s18 + $0x8] sm:$0xff] }
  0x3c   :  { %326 = vperm.xlu0 %668, %v308_v4   ;;  %351 = vperm.xlu2 %671, %v312_v5  }
  0x3d   :  { %376 = vperm.xlu1 %670, %v309_v2   ;;  %640 = vmatmul.msk.f32.vlgmr.msra.gmra.mxu2 %vm184_vm0, %v177_v16  ;;  %v677_v2 = vld [vmem:[#allocation8] ss:$0 sm:$0xff] }
  0x3e   :  { %235 = vmatpush.msra.mxu3 %v210_v62 }
  0x40   :  { %236 = vmatpush.msra.mxu3 %v209_v63 }
  0x44   :  { %672 = vset.pattern.permute.xlu0 %v957_v6  ;;  %346 = vperm.xlu2 %671, %v311_v7  }
  0x45   :  { %673 = vset.pattern.permute.xlu1 %v956_v0  ;;  %372 = vperm.xlu0 %672, %v308_v4  }
  0x46   :  { %316 = vperm.xlu1 %673, %v306_v8  }
  0x4c   :  { %341 = vperm.xlu2 %671, %v310_v9  }
  0x4d   :  { %364 = vperm.xlu0 %672, %v306_v8  }
  0x4e   :  { %674 = vset.pattern.permute.xlu1 %v957_v6 }
  0x4f   :  { %368 = vperm.xlu1 %674, %v307_v3  }
  0x54   :  { %412 = vperm.xlu2 %671, %v398_v12  }
  0x55   :  { %676 = vset.pattern.permute.xlu0 %v956_v0 }
  0x56   :  { %407 = vperm.xlu0 %676, %v397_v43  }
  0x57   :  { %675 = vset.pattern.permute.xlu1 %v956_v0  ;;  %v394_v0 = vld [vmem:[%s1237_s14 + $0x10] sm:$0xff] }
  0x58   :  { %417 = vperm.xlu1 %675, %v399_v29  }
  0x5c   :  { %490 = vperm.xlu2 %671, %v472_v13  }
  0x5e   :  { %475 = vperm.xlu0 %676, %v469_v54  }
  0x60   :  { %402 = vperm.xlu1 %675, %v396_v35  }
  0x64   :  { %480 = vperm.xlu2 %671, %v470_v14  }
  0x68   :  { %485 = vperm.xlu1 %675, %v471_v53  }
  0x6c   :  { %544 = vperm.xlu2 %671, %v540_v15  }
  0x70   :  { %549 = vperm.xlu1 %675, %v541_v58  }
  0x8e   :  { %v322_v17 = vpop.permute.xlu2 %321 }
  0x8f   :  { %v336_v40 = vmul.f32 %v334_v21, %v322_v17 }
  0x96   :  { %v352_v24 = vpop.permute.xlu2 %351 }
  0x9e   :  { %v347_v32 = vpop.permute.xlu2 %346 }
  0x9f   :  { %v360_v47 = vadd.f32 %v347_v32, %v336_v40  ;;  %v275_v40 = vld [vmem:[%s1233_s10 + $0x8] sm:$0xff] }
  0xa5   :  { %v357_v19 = vpop.permute.xlu1 %356 }
  0xa6   :  { %v332_v20 = vpop.permute.xlu0 %331  ;;  %v342_v44 = vpop.permute.xlu2 %341 }
  0xa7   :  { %v338_v22 = vmul.f32 %v334_v21, %v332_v20  ;;  %v244_v20 = vld [vmem:[%s1231_s8 + $0x10] sm:$0xff] }
  0xa9   :  { %v362_v27 = vadd.f32 %v357_v19, %v338_v22  ;;  %v245_v19 = vld [vmem:[%s1231_s8 + $0x18] sm:$0xff]  ;;  %v243_v22 = vld [vmem:[%s1231_s8 + $0x8] sm:$0xff] }
  0xaa   :  { %265 = vmatpush.msrb.mxu2 %v245_v19 }
  0xac   :  { %266 = vmatpush.msrb.mxu2 %v244_v20 }
  0xae   :  { %v327_v25 = vpop.permute.xlu0 %326  ;;  %v413_v10 = vpop.permute.xlu2 %412  ;;  %267 = vmatpush.msrb.mxu2 %v243_v22 }
  0xaf   :  { %v377_v26 = vpop.permute.xlu1 %376  ;;  %v337_v31 = vmul.f32 %v334_v21, %v327_v25  ;;  %v465_v25 = vld [vmem:[#allocation14] sm:$0xff] }
  0xb0   :  { %v383_v28 = vmul.f32 %v379_v23, %v377_v26 }
  0xb1   :  { %v361_v36 = vadd.f32 %v352_v24, %v337_v31  ;;  %v242_v24 = vld [vmem:[%s1231_s8] sm:$0xff] }
  0xb2   :  { %v387_v30 = vadd.f32 %v383_v28, %v362_v27  ;;  %268 = vmatpush.msrb.mxu2 %v242_v24  ;;  %v466_v27 = vld [vmem:[#allocation14 + $0x8] sm:$0xff]  ;;  %v678_v28 = vld [vmem:[#allocation10] ss:$0 sm:$0xff]  ;;  %v467_v31 = vld [vmem:[#allocation14 + $0x10] sm:$0xff] }
  0xb4   :  { %684 = vtanh.f32 %v387_v30 }
  0xb7   :  { %v373_v33 = vpop.permute.xlu0 %372 }
  0xb8   :  { %v317_v34 = vpop.permute.xlu1 %316  ;;  %v382_v37 = vmul.f32 %v379_v23, %v373_v33  ;;  %v468_v33 = vld [vmem:[#allocation14 + $0x18] sm:$0xff] }
  0xb9   :  { %v335_v41 = vmul.f32 %v334_v21, %v317_v34 }
  0xba   :  { %v685_v38 = vpop.eup %684  ;;  %v386_v39 = vadd.f32 %v382_v37, %v361_v36  ;;  %v491_v36 = vpop.permute.xlu2 %490 }
  0xbb   :  { %444 = vmatpush.msra.mxu0 %v685_v38  ;;  %v359_v48 = vadd.f32 %v342_v44, %v335_v41  ;;  %v277_v38 = vld [vmem:[%s1233_s10 + $0x18] sm:$0xff]  ;;  %v679_v41 = vld [vmem:[#allocation11] ss:$0 sm:$0xff] }
  0xbc   :  { %686 = vtanh.f32 %v386_v39  ;;  %v276_v39 = vld [vmem:[%s1233_s10 + $0x10] sm:$0xff]  ;;  %297 = vmatpush.msrb.mxu3 %v277_v38 }
  0xbe   :  { %298 = vmatpush.msrb.mxu3 %v276_v39 }
  0xbf   :  { %v365_v42 = vpop.permute.xlu0 %364 }
  0xc0   :  { %v380_v45 = vmul.f32 %v379_v23, %v365_v42  ;;  %v205_v3 = vpop.f32.mrf.mxu2  ;;  %v274_v42 = vld [vmem:[%s1233_s10] sm:$0xff]  ;;  %299 = vmatpush.msrb.mxu3 %v275_v40 }
  0xc1   :  { %v369_v46 = vpop.permute.xlu1 %368  ;;  %v206_v4 = vadd.f32 %v677_v2, %v205_v3  ;;  %v680_v3 = vld [vmem:[#allocation7 + $0x1] ss:$0 sm:$0xff] }
  0xc2   :  { %v381_v49 = vmul.f32 %v379_v23, %v369_v46  ;;  %v687_v50 = vpop.eup %686  ;;  %v384_v51 = vadd.f32 %v380_v45, %v359_v48  ;;  %300 = vmatpush.msrb.mxu3 %v274_v42 }
  0xc3   :  { %445 = vmatpush.msra.mxu0 %v687_v50 }
  0xc4   :  { %v385_v52 = vadd.f32 %v381_v49, %v360_v47  ;;  %v481_v49 = vpop.permute.xlu2 %480 }
  0xc6   :  { %688 = vtanh.f32 %v385_v52 }
  0xc7   :  { %690 = vtanh.f32 %v384_v51 }
  0xc8   :  { %692 = vtanh.f32 %v206_v4  ;;  %v408_v11 = vpop.permute.xlu0 %407 }
  0xca   :  { %v418_v8 = vpop.permute.xlu1 %417 }
  0xcc   :  { %v689_v55 = vpop.eup %688 }
  0xcd   :  { %446 = vmatpush.msra.mxu0 %v689_v55  ;;  %v691_v57 = vpop.eup %690 }
  0xce   :  { %v693_v5 = vpop.eup %692 }
  0xcf   :  { %447 = vmatpush.msra.mxu0 %v691_v57  ;;  %641 = vmatmul.msk.f32.vlgmr.msra.gmra.mxu3 %vm217_vm1, %v693_v5  ;;  %v538_v57 = vld [vmem:[%s1241_s18] sm:$0xff] }
  0xd0   :  { %644 = vmatmul.msk.f32.vlgmr.msra.gmra.mxu0 %vm217_vm1, %v392_v56  ;;  %v476_v51 = vpop.permute.xlu0 %475 }
  0xd2   :  { %v403_v15 = vpop.permute.xlu1 %402 }
  0xd8   :  { %645 = vmatmul.msk.f32.gmra.mxu0 %vm217_vm1, %v393_v61  ;;  %v545_v61 = vpop.permute.xlu2 %544 }
  0xda   :  { %v486_v43 = vpop.permute.xlu1 %485 }
  0xe0   :  { %646 = vmatmul.msk.f32.gmra.mxu0 %vm217_vm1, %v394_v0 }
  0xe2   :  { %v550_v63 = vpop.permute.xlu1 %549 }
  0xe8   :  { %647 = vmatmul.msk.f32.gmra.mxu0 %vm217_vm1, %v395_v1 }
 0x14d   :  { %v449_v6 = vpop.f32.mrf.mxu0 }
 0x14e   :  { %v450_v17 = vadd.f32 %v449_v6, %v403_v15  ;;  %v682_v6 = vld [vmem:[#allocation13] ss:$0 sm:$0xff] }
 0x152   :  { %v238_v29 = vpop.f32.mrf.mxu3 }
 0x153   :  { %v239_v30 = vadd.f32 %v678_v28, %v238_v29 }
 0x155   :  { %v452_v7 = vpop.f32.mrf.mxu0 }
 0x156   :  { %v453_v16 = vadd.f32 %v452_v7, %v408_v11 }
 0x15d   :  { %v455_v9 = vpop.f32.mrf.mxu0 }
 0x15e   :  { %v456_v13 = vadd.f32 %v455_v9, %v413_v10 }
 0x165   :  { %v458_v12 = vpop.f32.mrf.mxu0 }
 0x166   :  { %v459_v14 = vadd.f32 %v458_v12, %v418_v8  ;;  %v681_v8 = vld [vmem:[#allocation7] ss:$0 sm:$0xff] }
 0x168   :  { %694 = vtanh.f32 %v459_v14 }
 0x169   :  { %696 = vtanh.f32 %v456_v13  ;;  %v683_v13 = vld [vmem:[%s1255_s13] ss:$0 sm:$0xff] }
 0x16a   :  { %698 = vtanh.f32 %v453_v16 }
 0x16b   :  { %700 = vtanh.f32 %v450_v17 }
 0x16c   :  { %702 = vtanh.f32 %v239_v30 }
 0x16e   :  { %v695_v18 = vpop.eup %694 }
 0x16f   :  { %517 = vmatpush.msra.mxu1 %v695_v18  ;;  %v697_v21 = vpop.eup %696 }
 0x170   :  { %v699_v23 = vpop.eup %698 }
 0x171   :  { %518 = vmatpush.msra.mxu1 %v697_v21  ;;  %v701_v26 = vpop.eup %700 }
 0x172   :  { %v703_v32 = vpop.eup %702 }
 0x173   :  { %519 = vmatpush.msra.mxu1 %v699_v23  ;;  %642 = vmatmul.msk.f32.vlgmr.msrb.gmra.mxu2 %vm217_vm1, %v703_v32 }
 0x175   :  { %520 = vmatpush.msra.mxu1 %v701_v26 }
 0x176   :  { %648 = vmatmul.msk.f32.vlgmr.msra.gmra.mxu1 %vm217_vm1, %v465_v25 }
 0x17e   :  { %649 = vmatmul.msk.f32.gmra.mxu1 %vm217_vm1, %v466_v27 }
 0x186   :  { %650 = vmatmul.msk.f32.gmra.mxu1 %vm217_vm1, %v467_v31 }
 0x18e   :  { %651 = vmatmul.msk.f32.gmra.mxu1 %vm217_vm1, %v468_v33 }
 0x1f3   :  { %v522_v34 = vpop.f32.mrf.mxu1 }
 0x1f4   :  { %v523_v52 = vadd.f32 %v522_v34, %v476_v51 }
 0x1f6   :  { %v270_v45 = vpop.f32.mrf.mxu2 }
 0x1f7   :  { %v271_v48 = vadd.f32 %v679_v41, %v270_v45 }
 0x1fb   :  { %v525_v35 = vpop.f32.mrf.mxu1 }
 0x1fc   :  { %v526_v50 = vadd.f32 %v525_v35, %v481_v49 }
 0x203   :  { %v528_v37 = vpop.f32.mrf.mxu1 }
 0x204   :  { %v529_v46 = vadd.f32 %v528_v37, %v486_v43 }
 0x20b   :  { %v531_v44 = vpop.f32.mrf.mxu1 }
 0x20c   :  { %v532_v47 = vadd.f32 %v531_v44, %v491_v36 }
 0x20e   :  { %704 = vtanh.f32 %v532_v47 }
 0x20f   :  { %706 = vtanh.f32 %v271_v48 }
 0x210   :  { %708 = vtanh.f32 %v529_v46 }
 0x211   :  { %710 = vtanh.f32 %v526_v50 }
 0x212   :  { %712 = vtanh.f32 %v523_v52 }
 0x214   :  { %v705_v53 = vpop.eup %704 }
 0x215   :  { %v707_v54 = vpop.eup %706  ;;  %570 = vmatpush.msra.mxu2 %v705_v53 }
 0x216   :  { %v709_v55 = vpop.eup %708  ;;  %643 = vmatmul.msk.f32.vlgmr.msrb.gmra.mxu3 %vm217_vm1, %v707_v54 }
 0x217   :  { %571 = vmatpush.msra.mxu2 %v709_v55  ;;  %v711_v56 = vpop.eup %710 }
 0x218   :  { %v713_v58 = vpop.eup %712 }
 0x219   :  { %572 = vmatpush.msra.mxu2 %v711_v56 }
 0x21b   :  { %573 = vmatpush.msra.mxu2 %v713_v58 }
 0x21c   :  { %652 = vmatmul.msk.f32.vlgmr.msra.gmra.mxu2 %vm217_vm1, %v538_v57 }
 0x224   :  { %653 = vmatmul.msk.f32.gmra.mxu2 %vm217_vm1, %v539_v59 }
 0x299   :  { %v302_v9 = vpop.f32.mrf.mxu3 }
 0x29a   :  { %v303_v11 = vadd.f32 %v682_v6, %v302_v9 }
 0x29f   :  { %v575_v60 = vpop.f32.mrf.mxu2 }
 0x2a0   :  { %v576_v62 = vadd.f32 %v575_v60, %v545_v61 }
 0x2a2   :  { %714 = vtanh.f32 %v576_v62 }
 0x2a7   :  { %v578_v0 = vpop.f32.mrf.mxu2 }
 0x2a8   :  { %v579_v1 = vadd.f32 %v578_v0, %v550_v63  ;;  %v715_v2 = vpop.eup %714 }
 0x2a9   :  { %v589_v7 = vmul.f32 %v715_v2, %v680_v3  ;;  %v585_v12 = vmul.f32 %v715_v2, %v681_v8 }
 0x2aa   :  { %716 = vtanh.f32 %v579_v1 }
 0x2b0   :  { %v717_v4 = vpop.eup %716 }
 0x2b1   :  { %v590_v5 = vmul.f32 %v717_v4, %v680_v3  ;;  %v586_v10 = vmul.f32 %v717_v4, %v681_v8 }
 0x2b3   :  { %610 = vmatpush.msra.mxu3 %v590_v5 }
 0x2b5   :  { %611 = vmatpush.msra.mxu3 %v589_v7 }
 0x2b7   :  { %612 = vmatpush.msra.mxu3 %v586_v10 }
 0x2b9   :  { %613 = vmatpush.msra.mxu3 %v585_v12 }
 0x2ba   :  { %654 = vmatmul.msk.f32.vlgmr.msra.gmra.mxu3 %vm217_vm1, %v303_v11 }
 0x33d   :  { %v615_v14 = vpop.f32.mrf.mxu3 }
 0x33e   :  { %v616_v15 = vadd.f32 %v683_v13, %v615_v14 }
 0x340   :  { %618 = vst.msk [vmem:[#allocation16] sm:$0xff] %vm217_vm1, %v616_v15 }
 0x341   :  { %629 = dma.vmem_to_hbm [thread:$0]  %s625_s9, 128, %s627_s29, [#allocation4]  }
 0x342   :  { %944 = dma.done.wait [#allocation4], 128  }
 0x343   :  { %945 = vsyncadd [#allocation4], 4294967168 }
 0x344   :  { %634 = vsyncpa [#allocation3], 1 }
 0x345   :  { %635 = vsyncpa [#allocation6], 1 }
 0x346   :  { %636 = vsyncpa [#allocation9], 1 }
 0x347   :  { %637 = vsyncpa [#allocation12], 1 }
 0x348   :  { %638 = vsyncpa [#allocation15], 1 }
 0x349   :  { %639 = vsyncpa [#allocation4], 1 }

</bundles_post_ra>
